<compile_context>
chip_gen: v5e
topology: v5e:2x2
jax: 0.10.0
libtpu: 0.0.40
codegen_flags: <defaults>
</compile_context>

<pallas_src>
import re
from collections import Counter

import numpy as np
import jax
import jax.numpy as jnp
from jax import lax
from jax.experimental import pallas as pl
from jax.experimental.pallas import tpu as pltpu

embedding_dim = 50

custom_corpus = (
    "\nDeep learning models require large amounts of data for training.\n"
    "Natural Language Processing is an application of deep learning.\n"
    "Word embeddings capture the semantic meaning of words in a text.\n"
    "Skip-gram is a method to learn word embeddings using a neural network.\n"
)

words = re.findall(r"\b\w+\b", custom_corpus.lower())
word_counts = Counter(words)
vocab = list(word_counts.keys())
vocab_size = len(vocab)


def _round_up(x: int, m: int) -> int:
    return (x + m - 1) // m * m


def skipgram_matmul_kernel(x_ref, w_ref, out_ref):
    """One V-tile of   logits = X @ W.T   (W kept in nn.Linear (V, D) layout).

    x_ref   : (B_pad, D_pad)   bf16  VMEM-resident gathered embeddings (constant index map)
    w_ref   : (TILE_V, D_pad)  bf16  streamed / double-buffered weight tile
    out_ref : (B_pad, TILE_V)  f32   lane-dense logits tile
    """
    # Contract the D axis of BOTH operands -> (B_pad, TILE_V); the MXU consumes
    # the transposed RHS natively, so the (V, D) weight layout is kept as-is.
    out_ref[...] = lax.dot_general(
        x_ref[...], w_ref[...],
        dimension_numbers=(((1,), (1,)), ((), ())),
        preferred_element_type=jnp.float32,
    )


def prepare_projection_weight(out_weight, *, weight_dtype=jnp.bfloat16):
    """Pad + cast the nn.Linear (V, D) weight ONCE; persist the result.

    Doing this per-forward would add a full extra HBM pass over W (read f32,
    write padded bf16), cancelling the benefit of streaming W in bf16.
    """
    V, D = map(int, out_weight.shape)
    v_pad = _round_up(V, 128)   # lane-dense output / weight-row axis
    d_pad = _round_up(D, 128)   # lane-dense contraction axis
    return jnp.pad(out_weight.astype(weight_dtype),
                   ((0, v_pad - V), (0, d_pad - D)))


def skipgram_forward(center_word, emb_table, w_padded):
    """SkipGram forward:  logits = emb_table[center_word] @ W.T.

    center_word : (B,) int            word ids
    emb_table   : (V, D) float32      nn.Embedding weight
    w_padded    : (v_pad, d_pad) bf16 from prepare_projection_weight
    returns       (B, V) float32 logits (f32 MXU accumulation, bf16 operands)
    """
    B = int(center_word.shape[0])
    V, D = map(int, emb_table.shape)
    v_pad, d_pad = map(int, w_padded.shape)

    b_pad = _round_up(B, 16)    # bf16 packs 16 rows per sublane group
    tile_v = next(t for t in (2048, 1024, 512, 256, 128) if v_pad % t == 0)

    # Embedding row gather hoisted to XLA (O(B*D)); cast to bf16 once here so
    # the kernel does no per-step casting and the table never enters VMEM.
    ids = jnp.clip(center_word.astype(jnp.int32), 0, V - 1)
    x = jnp.take(emb_table, ids, axis=0).astype(w_padded.dtype)   # (B, D) bf16
    x = jnp.pad(x, ((0, b_pad - B), (0, d_pad - D)))              # (B_pad, D_pad)

    out = pl.pallas_call(
        skipgram_matmul_kernel,
        out_shape=jax.ShapeDtypeStruct((b_pad, v_pad), jnp.float32),
        grid_spec=pltpu.PrefetchScalarGridSpec(
            num_scalar_prefetch=0,
            grid=(v_pad // tile_v,),
            in_specs=[
                # Gathered embeddings: same block every step -> VMEM-resident.
                pl.BlockSpec((b_pad, d_pad), lambda j: (0, 0)),
                # Streamed, double-buffered weight tile in (V, D) layout.
                pl.BlockSpec((tile_v, d_pad), lambda j: (j, 0)),
            ],
            out_specs=pl.BlockSpec((b_pad, tile_v), lambda j: (0, j)),
        ),
        compiler_params=pltpu.CompilerParams(
            dimension_semantics=("parallel",),   # megacore-shard V tiles on v7x
        ),
    )(x, w_padded)

    return out[:B, :V]


if __name__ == "__main__":
    key = jax.random.PRNGKey(0)
    k_emb, k_lin, k_ids = jax.random.split(key, 3)

    V, D, B = vocab_size, embedding_dim, 8

    # nn.Embedding default init: N(0, 1)
    emb_table = jax.random.normal(k_emb, (V, D), dtype=jnp.float32)
    # nn.Linear(D, V, bias=False) default init: U(-1/sqrt(D), 1/sqrt(D)), weight (V, D)
    bound = 1.0 / (D ** 0.5)
    out_weight = jax.random.uniform(k_lin, (V, D), dtype=jnp.float32,
                                    minval=-bound, maxval=bound)

    center_word = jax.random.randint(k_ids, (B,), 0, V, dtype=jnp.int32)

    # Persist the padded bf16 projection weight (done once, reused per forward).
    w_padded = prepare_projection_weight(out_weight)

    logits = skipgram_forward(center_word, emb_table, w_padded)
    logits = jax.block_until_ready(logits)
    assert logits.shape == (B, V)

    # Tight reference: same math with both operands rounded to bf16 (the MXU
    # feed), exact f32 matmul in numpy.
    emb_bf = np.asarray(emb_table.astype(jnp.bfloat16).astype(jnp.float32))
    w_bf = np.asarray(out_weight.astype(jnp.bfloat16).astype(jnp.float32))
    ids_np = np.asarray(center_word)
    ref_bf = emb_bf[ids_np] @ w_bf.T
    assert np.allclose(np.asarray(logits), ref_bf, atol=1e-3, rtol=1e-3)

    # Loose check against the full-f32 PyTorch-equivalent forward.
    ref_f32 = np.asarray(emb_table)[ids_np] @ np.asarray(out_weight).T
    assert np.allclose(np.asarray(logits), ref_f32, atol=5e-2, rtol=5e-2)

    print("KERNEL_OK")
</pallas_src>

<mosaic_0001>
module attributes {stable_mosaic.version = 11 : i64} {
  func.func @skipgram_matmul_kernel(%arg0: i32, %arg1: memref<16x128xbf16, #tpu.memory_space<vmem>>, %arg2: memref<128x128xbf16, #tpu.memory_space<vmem>>, %arg3: memref<16x128xf32, #tpu.memory_space<vmem>>) attributes {dimension_semantics = [#tpu.dimension_semantics<parallel>], iteration_bounds = array<i64: 1>, scalar_prefetch = 0 : i64, scratch_operands = 0 : i64, tpu.core_type = #tpu.core_type<tc>, window_params = [{pipeline_mode = #tpu.pipeline_mode<synchronous>, transform_indices = @transform_0, window_bounds = array<i64: 16, 128>}, {transform_indices = @transform_1, window_bounds = array<i64: 128, 128>}, {transform_indices = @transform_2, window_bounds = array<i64: 16, 128>}]} {
    %c0 = arith.constant 0 : index
    %c0_0 = arith.constant 0 : index
    %0 = vector.load %arg1[%c0, %c0_0] : memref<16x128xbf16, #tpu.memory_space<vmem>>, vector<16x128xbf16>
    %c0_1 = arith.constant 0 : index
    %c0_2 = arith.constant 0 : index
    %1 = vector.load %arg2[%c0_1, %c0_2] : memref<128x128xbf16, #tpu.memory_space<vmem>>, vector<128x128xbf16>
    %cst = arith.constant dense<0.000000e+00> : vector<16x128xf32>
    %2 = tpu.matmul %0, %1, %cst {dimension_numbers = #tpu.dot_dimension_numbers<[1], [1], [0], [0], [0, 0, 1, 0], [], []>} : vector<16x128xbf16>, vector<128x128xbf16>, vector<16x128xf32> -> vector<16x128xf32>
    %c0_3 = arith.constant 0 : index
    %c0_4 = arith.constant 0 : index
    %3 = vector.load %arg3[%c0_3, %c0_4] : memref<16x128xf32, #tpu.memory_space<vmem>>, vector<16x128xf32>
    tpu.vector_store %arg3[%c0_3, %c0_4], %2 {strides = array<i32>} : memref<16x128xf32, #tpu.memory_space<vmem>>, vector<16x128xf32>,
    return
  }
  func.func @transform_0(%arg0: i32) -> (i32, i32) {
    %c0_i32 = arith.constant 0 : i32
    %c0_i32_0 = arith.constant 0 : i32
    %c0_i32_1 = arith.constant 0 : i32
    return %c0_i32, %c0_i32_0 : i32, i32
  }
  func.func @transform_1(%arg0: i32) -> (i32, i32) {
    %c0_i32 = arith.constant 0 : i32
    %c0_i32_0 = arith.constant 0 : i32
    return %arg0, %c0_i32 : i32, i32
  }
  func.func @transform_2(%arg0: i32) -> (i32, i32) {
    %c0_i32 = arith.constant 0 : i32
    %c0_i32_0 = arith.constant 0 : i32
    return %c0_i32, %arg0 : i32, i32
  }
}

</mosaic_0001>

<bundles_post_ra>
// kernel: tpu_custom_call.1
= control target key start
LH: loop header
LB: loop body
LE: loop exit
PB: predicated region body
PF: predicated region fallthrough
CT: control target
= control target key end

     0   :  { %7 = vsyncpa [#allocation3], 0  ;;  %s313_s0 = inlined_call_operand.hbm [shape: bf16[16,128], index: 0, kind: input, shape index: {}]   ;;  %s314_s1 = inlined_call_operand.hbm [shape: bf16[128,128], index: 1, kind: input, shape index: {}]   ;;  %s315_s2 = inlined_call_operand.hbm [shape: f32[16,128], index: 2, kind: output, shape index: {}]  }
   0x1   :  { %8 = vsyncpa [#allocation6], 0 }
   0x2   :  { %9 = vsyncpa [#allocation4], 0  ;;  %s14_s11 = sshll.u32 %s313_s0, 4  ;;  %s282_s12 = smov [#allocation2]   ;;  %s15_s11 = int_to_ptr.hbm [resolvable:$true] %s14_s11 }
   0x3   :  { %s16_s13 = sshll.u32 %s282_s12, 4  ;;  %s27_s16 = sshll.u32 %s314_s1, 4  ;;  %s17_s13 = int_to_ptr.vmem [resolvable:$true] %s16_s13  ;;  %s28_s16 = int_to_ptr.hbm [resolvable:$true] %s27_s16 }
   0x4   :  { %s283_s17 = smov 64   ;;  %s284_s18 = smov 4  }
   0x5   :  { %22 = dma.hbm_to_vmem [thread:$0]  %s15_s11, 128, %s17_s13, [#allocation3], %s283_s17, %s283_s17, %s284_s18  }
   0x6   :  { %s285_s19 = smov [#allocation5]  }
   0x7   :  { %s29_s20 = sshll.u32 %s285_s19, 4  ;;  %s30_s20 = int_to_ptr.vmem [resolvable:$true] %s29_s20 }
   0x8   :  { %35 = dma.hbm_to_vmem [thread:$0]  %s28_s16, 1024, %s30_s20, [#allocation6], %s283_s17, %s283_s17, %s284_s18  }
   0x9   :  { %276 = dma.done.wait [#allocation3], 128  }
   0xa   :  { %277 = vsyncadd [#allocation3], 4294967168 }
   0xb   :  { %278 = dma.done.wait [#allocation6], 1024  }
   0xc   :  { %279 = vsyncadd [#allocation6], 4294966272  ;;  %v196_v0 = vld [vmem:[#allocation5 + $0x38] sm:$0xff]  ;;  %v195_v1 = vld [vmem:[#allocation5 + $0x30] sm:$0xff]  ;;  %s286_s0 = smov [#allocation7]   ;;  %s138_s23 = sshll.u32 %s315_s2, 4  ;;  %s139_s23 = int_to_ptr.hbm [resolvable:$true] %s138_s23 }
   0xd   :  { %116 = vmatpush.bf16.xpose.msra.mxu0 %v196_v0  ;;  %v194_v2 = vld [vmem:[#allocation5 + $0x28] sm:$0xff]  ;;  %v193_v3 = vld [vmem:[#allocation5 + $0x20] sm:$0xff]  ;;  %v192_v4 = vld [vmem:[#allocation5 + $0x18] sm:$0xff]  ;;  %s136_s1 = sshll.u32 %s286_s0, 4  ;;  %s287_s24 = smov 128   ;;  %s137_s1 = int_to_ptr.vmem [resolvable:$true] %s136_s1 }
   0xe   :  { %v191_v5 = vld [vmem:[#allocation5 + $0x10] sm:$0xff]  ;;  %v190_v6 = vld [vmem:[#allocation5 + $0x8] sm:$0xff]  ;;  %v189_v7 = vld [vmem:[#allocation5] sm:$0xff]  ;;  %s288_s25 = smov 8  }
   0xf   :  { %v188_v8 = vld [vmem:[#allocation2] sm:$0xff] }
  0x15   :  { %117 = vmatpush.bf16.xpose.msra.mxu0 %v195_v1 }
  0x1d   :  { %118 = vmatpush.bf16.xpose.msra.mxu0 %v194_v2 }
  0x25   :  { %119 = vmatpush.bf16.xpose.msra.mxu0 %v193_v3 }
  0x2d   :  { %120 = vmatpush.bf16.xpose.msra.mxu0 %v192_v4 }
  0x35   :  { %121 = vmatpush.bf16.xpose.msra.mxu0 %v191_v5 }
  0x3d   :  { %122 = vmatpush.bf16.xpose.msra.mxu0 %v190_v6 }
  0x45   :  { %123 = vmatpush.bf16.xpose.msra.mxu0 %v189_v7 }
  0x4c   :  { %124 = vmatmul.bf16.vlgmr.msra.gmra.mxu0 %v188_v8 }
  0xc9   :  { %v125_v9 = vpop.f32.mrf.mxu0 }
  0xca   :  { %130 = vst [vmem:[#allocation7] sm:$0xff] %v125_v9 }
  0xd1   :  { %v127_v10 = vpop.f32.mrf.mxu0 }
  0xd2   :  { %131 = vst [vmem:[#allocation7 + $0x8] sm:$0xff] %v127_v10 }
  0xd3   :  { %144 = dma.vmem_to_hbm [thread:$0]  %s137_s1, 256, %s139_s23, [#allocation4], %s287_s24, %s287_s24, %s288_s25  }
  0xd4   :  { %280 = dma.done.wait [#allocation4], 256  }
  0xd5   :  { %281 = vsyncadd [#allocation4], 4294967040 }
  0xd6   :  { %149 = vsyncpa [#allocation3], 1 }
  0xd7   :  { %150 = vsyncpa [#allocation6], 1 }
  0xd8   :  { %151 = vsyncpa [#allocation4], 1 }

</bundles_post_ra>
